<compile_context>
chip_gen: v7x
topology: tpu7x:2x2x1
jax: 0.10.0
libtpu: 0.0.40
codegen_flags: <defaults>
</compile_context>

<pallas_src>
import functools

import jax
import jax.numpy as jnp
from jax.experimental import pallas as pl
from jax.experimental.pallas import tpu as pltpu

_LANES = 128
# Default block height (rows of 128 lanes). ~1 MiB f32 per input block.
# Sweep 1024-4096 if tuning; must be a multiple of 8 (f32) / 16 (bf16).
_DEFAULT_BLOCK_ROWS = 2048


def _make_kernel(block_rows, valid_rows, needs_mask):
  """Builds the reduction kernel for a fixed (static) tiling."""

  def kernel(x_ref, t_ref, out_ref, pc_ref, nc_ref, pb_ref, nb_ref):
    i = pl.program_id(0)

    @pl.when(i == 0)
    def _():
      pc_ref[...] = jnp.zeros_like(pc_ref)
      nc_ref[...] = jnp.zeros_like(nc_ref)
      pb_ref[...] = jnp.zeros_like(pb_ref)
      nb_ref[...] = jnp.zeros_like(nb_ref)

    x = x_ref[...].astype(jnp.float32)
    t = t_ref[...].astype(jnp.float32)

    if needs_mask:
      # Last block may extend past the array; its out-of-bounds region holds
      # garbage. Mask BEFORE any arithmetic so NaNs can't propagate:
      # x -> 0 and t -> -1 (outside both pos and neg masks => zero contribution).
      row = jax.lax.broadcasted_iota(jnp.int32, x.shape, 0) + i * block_rows
      valid = row < valid_rows
      x = jnp.where(valid, x, 0.0)
      t = jnp.where(valid, t, -1.0)

    pos = (t == 1.0).astype(jnp.float32)
    neg = (t == 0.0).astype(jnp.float32)

    # Numerically stable binary_cross_entropy_with_logits (per element):
    #   max(x, 0) - x * t + log(1 + exp(-|x|))
    bce = jnp.maximum(x, 0.0) - x * t + jnp.log1p(jnp.exp(-jnp.abs(x)))

    # Per-lane partial sums (VPU adds only); cross-lane reduce happens once at
    # the end of the grid.
    pc_ref[...] += jnp.sum(pos, axis=0, keepdims=True)
    nc_ref[...] += jnp.sum(neg, axis=0, keepdims=True)
    pb_ref[...] += jnp.sum(pos * bce, axis=0, keepdims=True)
    nb_ref[...] += jnp.sum(neg * bce, axis=0, keepdims=True)

    @pl.when(i == pl.num_programs(0) - 1)
    def _():
      out_ref[0] = jnp.sum(pc_ref[...])
      out_ref[1] = jnp.sum(nc_ref[...])
      out_ref[2] = jnp.sum(pb_ref[...])
      out_ref[3] = jnp.sum(nb_ref[...])

  return kernel


@functools.partial(jax.jit, static_argnames=("neg_weight", "block_rows"))
def balanced_bce_loss(inp, target, neg_weight=1.0,
                      block_rows=_DEFAULT_BLOCK_ROWS):
  """Pallas implementation of BalancedBCELoss.forward."""
  n_elems = inp.size  # true element count (for the two means)

  # Mirrors `target = target.type_as(input)` (no-op when dtypes already match).
  if target.dtype != inp.dtype:
    target = target.astype(inp.dtype)

  # Keep native dtype on the wire; cast to f32 inside the kernel.
  x_flat = inp.reshape(-1)
  t_flat = target.reshape(-1)

  n_rows = pl.cdiv(n_elems, _LANES)
  if n_rows * _LANES != n_elems:
    # Ragged tail only: pad to a full 128-lane row. Padded targets are -1 so
    # they fall outside both masks and contribute exactly zero to every
    # reduction. (Typical NCHW image shapes divide 128 and skip this copy.)
    pad = n_rows * _LANES - n_elems
    x_flat = jnp.pad(x_flat, (0, pad), constant_values=0)
    t_flat = jnp.pad(t_flat, (0, pad), constant_values=-1)
  x2d = x_flat.reshape(n_rows, _LANES)
  t2d = t_flat.reshape(n_rows, _LANES)

  # Block height: the whole array if it fits, else `block_rows` (mult. of 8).
  block_rows = max(8, (int(block_rows) // 8) * 8)
  block_rows_eff = n_rows if n_rows <= block_rows else block_rows
  grid = (pl.cdiv(n_rows, block_rows_eff),)
  needs_mask = (n_rows % block_rows_eff) != 0

  kernel = _make_kernel(block_rows_eff, n_rows, needs_mask)

  sums = pl.pallas_call(
      kernel,
      out_shape=jax.ShapeDtypeStruct((4,), jnp.float32),
      grid_spec=pltpu.PrefetchScalarGridSpec(
          num_scalar_prefetch=0,
          grid=grid,
          in_specs=[
              pl.BlockSpec((block_rows_eff, _LANES), lambda i: (i, 0)),
              pl.BlockSpec((block_rows_eff, _LANES), lambda i: (i, 0)),
          ],
          out_specs=pl.BlockSpec(memory_space=pltpu.MemorySpace.SMEM),
          scratch_shapes=[pltpu.VMEM((1, _LANES), jnp.float32)] * 4,
      ),
      compiler_params=pltpu.CompilerParams(
          # Sequential accumulation into shared scratch => must stay arbitrary.
          dimension_semantics=("arbitrary",)),
  )(x2d, t2d)

  pos_cnt, neg_cnt, pos_bce, neg_bce = sums[0], sums[1], sums[2], sums[3]

  pos_num = jnp.maximum(pos_cnt, 1e-12)
  neg_num = jnp.maximum(neg_cnt, 1e-12)
  w_pos = 1.0 / pos_num
  w_neg = (1.0 / neg_num) * neg_weight

  # weight.mean() over all N elements (zeros where target not in {0,1}).
  weight_mean = (pos_cnt * w_pos + neg_cnt * w_neg) / n_elems

  # mean( (weight / weight_mean) * bce ) over all N elements.
  loss = (w_pos * pos_bce + w_neg * neg_bce) / weight_mean / n_elems
  return loss


def _reference_loss(inp, target, neg_weight=1.0):
  """Pure-JAX reference mirroring the PyTorch code, for verification."""
  t = target.astype(inp.dtype)
  pos_mask = t == 1
  neg_mask = t == 0
  pos_num = jnp.maximum(pos_mask.sum().astype(jnp.float32), 1e-12)
  neg_num = jnp.maximum(neg_mask.sum().astype(jnp.float32), 1e-12)
  weight = jnp.zeros_like(t, dtype=jnp.float32)
  weight = jnp.where(pos_mask, 1.0 / pos_num, weight)
  weight = jnp.where(neg_mask, (1.0 / neg_num) * neg_weight, weight)
  weight = weight / weight.mean()
  x = inp.astype(jnp.float32)
  tf = t.astype(jnp.float32)
  bce = jnp.maximum(x, 0.0) - x * tf + jnp.log1p(jnp.exp(-jnp.abs(x)))
  return jnp.mean(weight * bce)


if __name__ == "__main__":
  key = jax.random.PRNGKey(0)
  k1, k2, k3, k4 = jax.random.split(key, 4)

  # NCHW, as in the PyTorch module.
  B, C, H, W = 2, 4, 16, 16
  logits = jax.random.normal(k1, (B, C, H, W), dtype=jnp.float32)
  target = jax.random.bernoulli(k2, p=0.25, shape=(B, C, H, W)).astype(
      jnp.float32)

  # 1) Default tiling (whole array in one block).
  loss = jax.block_until_ready(balanced_bce_loss(logits, target,
                                                 neg_weight=1.0))
  ref = _reference_loss(logits, target, neg_weight=1.0)
  assert jnp.allclose(loss, ref, rtol=1e-5, atol=1e-6), (loss, ref)

  # 2) Force multi-block accumulation path (small block, several grid steps).
  loss2 = jax.block_until_ready(balanced_bce_loss(logits, target,
                                                  neg_weight=2.0,
                                                  block_rows=8))
  ref2 = _reference_loss(logits, target, neg_weight=2.0)
  assert jnp.allclose(loss2, ref2, rtol=1e-5, atol=1e-6), (loss2, ref2)

  # 3) Ragged size: exercises the pad path + in-kernel partial-block masking.
  shp = (3, 5, 17, 9)  # 2295 elements, not a multiple of 128
  logits3 = jax.random.normal(k3, shp, dtype=jnp.float32)
  target3 = jax.random.bernoulli(k4, p=0.3, shape=shp).astype(jnp.float32)
  loss3 = jax.block_until_ready(balanced_bce_loss(logits3, target3,
                                                  neg_weight=1.5,
                                                  block_rows=8))
  ref3 = _reference_loss(logits3, target3, neg_weight=1.5)
  assert jnp.allclose(loss3, ref3, rtol=1e-5, atol=1e-6), (loss3, ref3)

  print("KERNEL_OK")
</pallas_src>

<mosaic_0001>
module attributes {stable_mosaic.version = 11 : i64} {
  func.func @kernel(%arg0: i32, %arg1: memref<16x128xf32, #tpu.memory_space<vmem>>, %arg2: memref<16x128xf32, #tpu.memory_space<vmem>>, %arg3: memref<4xf32, #tpu.memory_space<smem>>, %arg4: memref<1x128xf32, #tpu.memory_space<vmem>>, %arg5: memref<1x128xf32, #tpu.memory_space<vmem>>, %arg6: memref<1x128xf32, #tpu.memory_space<vmem>>, %arg7: memref<1x128xf32, #tpu.memory_space<vmem>>) attributes {dimension_semantics = [#tpu.dimension_semantics<arbitrary>], iteration_bounds = array<i64: 1>, scalar_prefetch = 0 : i64, scratch_operands = 4 : i64, tpu.core_type = #tpu.core_type<tc>, window_params = [{transform_indices = @transform_0, window_bounds = array<i64: 16, 128>}, {transform_indices = @transform_1, window_bounds = array<i64: 16, 128>}, {transform_indices = @transform_2, window_bounds = array<i64: 4>}]} {
    %c0_i32 = arith.constant 0 : i32
    %0 = arith.cmpi eq, %arg0, %c0_i32 : i32
    %1 = arith.extui %0 : i1 to i32
    %c0_i32_0 = arith.constant 0 : i32
    %2 = arith.cmpi ne, %1, %c0_i32_0 : i32
    scf.if %2 {
      %cst_29 = arith.constant 0.000000e+00 : f32
      %48 = vector.broadcast %cst_29 : f32 to vector<1x128xf32>
      %c0_30 = arith.constant 0 : index
      %c0_31 = arith.constant 0 : index
      %49 = vector.load %arg4[%c0_30, %c0_31] : memref<1x128xf32, #tpu.memory_space<vmem>>, vector<1x128xf32>
      tpu.vector_store %arg4[%c0_30, %c0_31], %48 {strides = array<i32>} : memref<1x128xf32, #tpu.memory_space<vmem>>, vector<1x128xf32>,
      %cst_32 = arith.constant 0.000000e+00 : f32
      %50 = vector.broadcast %cst_32 : f32 to vector<1x128xf32>
      %c0_33 = arith.constant 0 : index
      %c0_34 = arith.constant 0 : index
      %51 = vector.load %arg5[%c0_33, %c0_34] : memref<1x128xf32, #tpu.memory_space<vmem>>, vector<1x128xf32>
      tpu.vector_store %arg5[%c0_33, %c0_34], %50 {strides = array<i32>} : memref<1x128xf32, #tpu.memory_space<vmem>>, vector<1x128xf32>,
      %cst_35 = arith.constant 0.000000e+00 : f32
      %52 = vector.broadcast %cst_35 : f32 to vector<1x128xf32>
      %c0_36 = arith.constant 0 : index
      %c0_37 = arith.constant 0 : index
      %53 = vector.load %arg6[%c0_36, %c0_37] : memref<1x128xf32, #tpu.memory_space<vmem>>, vector<1x128xf32>
      tpu.vector_store %arg6[%c0_36, %c0_37], %52 {strides = array<i32>} : memref<1x128xf32, #tpu.memory_space<vmem>>, vector<1x128xf32>,
      %cst_38 = arith.constant 0.000000e+00 : f32
      %54 = vector.broadcast %cst_38 : f32 to vector<1x128xf32>
      %c0_39 = arith.constant 0 : index
      %c0_40 = arith.constant 0 : index
      %55 = vector.load %arg7[%c0_39, %c0_40] : memref<1x128xf32, #tpu.memory_space<vmem>>, vector<1x128xf32>
      tpu.vector_store %arg7[%c0_39, %c0_40], %54 {strides = array<i32>} : memref<1x128xf32, #tpu.memory_space<vmem>>, vector<1x128xf32>,
    } else {
    }
    %c0 = arith.constant 0 : index
    %c0_1 = arith.constant 0 : index
    %3 = vector.load %arg1[%c0, %c0_1] : memref<16x128xf32, #tpu.memory_space<vmem>>, vector<16x128xf32>
    %c0_2 = arith.constant 0 : index
    %c0_3 = arith.constant 0 : index
    %4 = vector.load %arg2[%c0_2, %c0_3] : memref<16x128xf32, #tpu.memory_space<vmem>>, vector<16x128xf32>
    %cst = arith.constant 1.000000e+00 : f32
    %5 = vector.broadcast %cst : f32 to vector<16x128xf32>
    %6 = arith.cmpf oeq, %4, %5 : vector<16x128xf32>
    %7 = arith.extui %6 : vector<16x128xi1> to vector<16x128xi32>
    %8 = arith.sitofp %7 : vector<16x128xi32> to vector<16x128xf32>
    %cst_4 = arith.constant 0.000000e+00 : f32
    %9 = vector.broadcast %cst_4 : f32 to vector<16x128xf32>
    %10 = arith.cmpf oeq, %4, %9 : vector<16x128xf32>
    %11 = arith.extui %10 : vector<16x128xi1> to vector<16x128xi32>
    %12 = arith.sitofp %11 : vector<16x128xi32> to vector<16x128xf32>
    %cst_5 = arith.constant 0.000000e+00 : f32
    %13 = vector.broadcast %cst_5 : f32 to vector<16x128xf32>
    %14 = arith.maximumf %3, %13 : vector<16x128xf32>
    %15 = arith.mulf %3, %4 : vector<16x128xf32>
    %16 = arith.subf %14, %15 : vector<16x128xf32>
    %17 = math.absf %3 : vector<16x128xf32>
    %cst_6 = arith.constant 0.000000e+00 : f32
    %18 = vector.broadcast %cst_6 : f32 to vector<16x128xf32>
    %19 = arith.subf %18, %17 : vector<16x128xf32>
    %20 = math.exp %19 : vector<16x128xf32>
    %21 = math.log1p %20 : vector<16x128xf32>
    %22 = arith.addf %16, %21 : vector<16x128xf32>
    %c0_7 = arith.constant 0 : index
    %c0_8 = arith.constant 0 : index
    %23 = vector.load %arg4[%c0_7, %c0_8] : memref<1x128xf32, #tpu.memory_space<vmem>>, vector<1x128xf32>
    %cst_9 = arith.constant dense<0.000000e+00> : vector<128xf32>
    %24 = vector.multi_reduction <add>, %8, %cst_9 [0] : vector<16x128xf32> to vector<128xf32>
    %25 = vector.shape_cast %24 : vector<128xf32> to vector<1x128xf32>
    %26 = arith.addf %23, %25 : vector<1x128xf32>
    %c0_10 = arith.constant 0 : index
    %c0_11 = arith.constant 0 : index
    %27 = vector.load %arg4[%c0_10, %c0_11] : memref<1x128xf32, #tpu.memory_space<vmem>>, vector<1x128xf32>
    tpu.vector_store %arg4[%c0_10, %c0_11], %26 {strides = array<i32>} : memref<1x128xf32, #tpu.memory_space<vmem>>, vector<1x128xf32>,
    %c0_12 = arith.constant 0 : index
    %c0_13 = arith.constant 0 : index
    %28 = vector.load %arg5[%c0_12, %c0_13] : memref<1x128xf32, #tpu.memory_space<vmem>>, vector<1x128xf32>
    %cst_14 = arith.constant dense<0.000000e+00> : vector<128xf32>
    %29 = vector.multi_reduction <add>, %12, %cst_14 [0] : vector<16x128xf32> to vector<128xf32>
    %30 = vector.shape_cast %29 : vector<128xf32> to vector<1x128xf32>
    %31 = arith.addf %28, %30 : vector<1x128xf32>
    %c0_15 = arith.constant 0 : index
    %c0_16 = arith.constant 0 : index
    %32 = vector.load %arg5[%c0_15, %c0_16] : memref<1x128xf32, #tpu.memory_space<vmem>>, vector<1x128xf32>
    tpu.vector_store %arg5[%c0_15, %c0_16], %31 {strides = array<i32>} : memref<1x128xf32, #tpu.memory_space<vmem>>, vector<1x128xf32>,
    %c0_17 = arith.constant 0 : index
    %c0_18 = arith.constant 0 : index
    %33 = vector.load %arg6[%c0_17, %c0_18] : memref<1x128xf32, #tpu.memory_space<vmem>>, vector<1x128xf32>
    %34 = arith.mulf %8, %22 : vector<16x128xf32>
    %cst_19 = arith.constant dense<0.000000e+00> : vector<128xf32>
    %35 = vector.multi_reduction <add>, %34, %cst_19 [0] : vector<16x128xf32> to vector<128xf32>
    %36 = vector.shape_cast %35 : vector<128xf32> to vector<1x128xf32>
    %37 = arith.addf %33, %36 : vector<1x128xf32>
    %c0_20 = arith.constant 0 : index
    %c0_21 = arith.constant 0 : index
    %38 = vector.load %arg6[%c0_20, %c0_21] : memref<1x128xf32, #tpu.memory_space<vmem>>, vector<1x128xf32>
    tpu.vector_store %arg6[%c0_20, %c0_21], %37 {strides = array<i32>} : memref<1x128xf32, #tpu.memory_space<vmem>>, vector<1x128xf32>,
    %c0_22 = arith.constant 0 : index
    %c0_23 = arith.constant 0 : index
    %39 = vector.load %arg7[%c0_22, %c0_23] : memref<1x128xf32, #tpu.memory_space<vmem>>, vector<1x128xf32>
    %40 = arith.mulf %12, %22 : vector<16x128xf32>
    %cst_24 = arith.constant dense<0.000000e+00> : vector<128xf32>
    %41 = vector.multi_reduction <add>, %40, %cst_24 [0] : vector<16x128xf32> to vector<128xf32>
    %42 = vector.shape_cast %41 : vector<128xf32> to vector<1x128xf32>
    %43 = arith.addf %39, %42 : vector<1x128xf32>
    %c0_25 = arith.constant 0 : index
    %c0_26 = arith.constant 0 : index
    %44 = vector.load %arg7[%c0_25, %c0_26] : memref<1x128xf32, #tpu.memory_space<vmem>>, vector<1x128xf32>
    tpu.vector_store %arg7[%c0_25, %c0_26], %43 {strides = array<i32>} : memref<1x128xf32, #tpu.memory_space<vmem>>, vector<1x128xf32>,
    %c0_i32_27 = arith.constant 0 : i32
    %45 = arith.cmpi eq, %arg0, %c0_i32_27 : i32
    %46 = arith.extui %45 : i1 to i32
    %c0_i32_28 = arith.constant 0 : i32
    %47 = arith.cmpi ne, %46, %c0_i32_28 : i32
    scf.if %47 {
      %c0_29 = arith.constant 0 : index
      %c0_30 = arith.constant 0 : index
      %48 = vector.load %arg4[%c0_29, %c0_30] : memref<1x128xf32, #tpu.memory_space<vmem>>, vector<1x128xf32>
      %49 = vector.shape_cast %48 : vector<1x128xf32> to vector<1x1x128xf32>
      %cst_31 = arith.constant dense<0.000000e+00> : vector<1xf32>
      %50 = vector.multi_reduction <add>, %49, %cst_31 [1, 2] : vector<1x1x128xf32> to vector<1xf32>
      %51 = vector.shape_cast %50 : vector<1xf32> to vector<1x1x1xf32>
      %52 = vector.extract %51[0, 0, 0] : f32 from vector<1x1x1xf32>
      %c0_32 = arith.constant 0 : index
      %53 = memref.load %arg3[%c0_32] : memref<4xf32, #tpu.memory_space<smem>>
      memref.store %52, %arg3[%c0_32] : memref<4xf32, #tpu.memory_space<smem>>
      %c0_33 = arith.constant 0 : index
      %c0_34 = arith.constant 0 : index
      %54 = vector.load %arg5[%c0_33, %c0_34] : memref<1x128xf32, #tpu.memory_space<vmem>>, vector<1x128xf32>
      %55 = vector.shape_cast %54 : vector<1x128xf32> to vector<1x1x128xf32>
      %cst_35 = arith.constant dense<0.000000e+00> : vector<1xf32>
      %56 = vector.multi_reduction <add>, %55, %cst_35 [1, 2] : vector<1x1x128xf32> to vector<1xf32>
      %57 = vector.shape_cast %56 : vector<1xf32> to vector<1x1x1xf32>
      %58 = vector.extract %57[0, 0, 0] : f32 from vector<1x1x1xf32>
      %c1 = arith.constant 1 : index
      %59 = memref.load %arg3[%c1] : memref<4xf32, #tpu.memory_space<smem>>
      memref.store %58, %arg3[%c1] : memref<4xf32, #tpu.memory_space<smem>>
      %c0_36 = arith.constant 0 : index
      %c0_37 = arith.constant 0 : index
      %60 = vector.load %arg6[%c0_36, %c0_37] : memref<1x128xf32, #tpu.memory_space<vmem>>, vector<1x128xf32>
      %61 = vector.shape_cast %60 : vector<1x128xf32> to vector<1x1x128xf32>
      %cst_38 = arith.constant dense<0.000000e+00> : vector<1xf32>
      %62 = vector.multi_reduction <add>, %61, %cst_38 [1, 2] : vector<1x1x128xf32> to vector<1xf32>
      %63 = vector.shape_cast %62 : vector<1xf32> to vector<1x1x1xf32>
      %64 = vector.extract %63[0, 0, 0] : f32 from vector<1x1x1xf32>
      %c2 = arith.constant 2 : index
      %65 = memref.load %arg3[%c2] : memref<4xf32, #tpu.memory_space<smem>>
      memref.store %64, %arg3[%c2] : memref<4xf32, #tpu.memory_space<smem>>
      %c0_39 = arith.constant 0 : index
      %c0_40 = arith.constant 0 : index
      %66 = vector.load %arg7[%c0_39, %c0_40] : memref<1x128xf32, #tpu.memory_space<vmem>>, vector<1x128xf32>
      %67 = vector.shape_cast %66 : vector<1x128xf32> to vector<1x1x128xf32>
      %cst_41 = arith.constant dense<0.000000e+00> : vector<1xf32>
      %68 = vector.multi_reduction <add>, %67, %cst_41 [1, 2] : vector<1x1x128xf32> to vector<1xf32>
      %69 = vector.shape_cast %68 : vector<1xf32> to vector<1x1x1xf32>
      %70 = vector.extract %69[0, 0, 0] : f32 from vector<1x1x1xf32>
      %c3 = arith.constant 3 : index
      %71 = memref.load %arg3[%c3] : memref<4xf32, #tpu.memory_space<smem>>
      memref.store %70, %arg3[%c3] : memref<4xf32, #tpu.memory_space<smem>>
    } else {
    }
    return
  }
  func.func @transform_0(%arg0: i32) -> (i32, i32) {
    %c0_i32 = arith.constant 0 : i32
    %c0_i32_0 = arith.constant 0 : i32
    return %arg0, %c0_i32 : i32, i32
  }
  func.func @transform_1(%arg0: i32) -> (i32, i32) {
    %c0_i32 = arith.constant 0 : i32
    %c0_i32_0 = arith.constant 0 : i32
    return %arg0, %c0_i32 : i32, i32
  }
  func.func @transform_2(%arg0: i32) -> i32 {
    %c0_i32 = arith.constant 0 : i32
    %c0_i32_0 = arith.constant 0 : i32
    return %c0_i32 : i32
  }
}

</mosaic_0001>

<bundles_post_ra>
// kernel: balanced_bce_loss.1
= control target key start
LH: loop header
LB: loop body
LE: loop exit
PB: predicated region body
PF: predicated region fallthrough
CT: control target
= control target key end

     0   :  { %v221_v3 = vmov 0.0   ;;  %s283_s0 = inlined_call_operand.vmem [shape: f32[16,128], index: 0, kind: input, shape index: {}]   ;;  %s284_s1 = inlined_call_operand.vmem [shape: f32[16,128], index: 1, kind: input, shape index: {}]   ;;  %s285_s2 = inlined_call_operand.vmem [shape: f32[4], index: 2, kind: output, shape index: {}]  }
   0x1   :  { %v241_v0 = vld [vmem:[%s283_s0] sm:$0xff]  ;;  %v246_v1 = vld [vmem:[%s283_s0 + $0x8] sm:$0xff]  ;;  %16 = vst [vmem:[#allocation2] sm:$0x1] %v221_v3  ;;  %17 = vst [vmem:[#allocation3] sm:$0x1] %v221_v3 }
   0x2   :  { %v22_v2 = vld [vmem:[%s284_s1] sm:$0xff]  ;;  %v23_v4 = vld [vmem:[%s284_s1 + $0x8] sm:$0xff]  ;;  %v42_v5 = vand.u32 2147483647, %v241_v0  ;;  %v43_v6 = vand.u32 2147483647, %v246_v1 }
   0x3   :  { %vm24_vm0 = vcmp.eq.f32.partialorder %v22_v2, 1.0  ;;  %18 = vst [vmem:[#allocation4] sm:$0x1] %v221_v3  ;;  %19 = vst [vmem:[#allocation5] sm:$0x1] %v221_v3  ;;  %vm25_vm1 = vcmp.eq.f32.partialorder %v23_v4, 1.0 }
   0x4   :  { %v256_v7 = vsel %vm24_vm0, 1.0, %v221_v3  ;;  %vm30_vm2 = vcmp.eq.f32.partialorder %v22_v2, 0.0 }
   0x5   :  { %7 = vsyncpa [#allocation7], 0  ;;  %v258_v8 = vsel %vm25_vm1, 1.0, %v221_v3  ;;  %v44_v9 = vsub.f32 0.0, %v42_v5  ;;  %v45_v10 = vsub.f32 0.0, %v43_v6  ;;  %vm31_vm3 = vcmp.eq.f32.partialorder %v23_v4, 0.0 }
   0x6   :  { %v71_v11 = vadd.f32 %v258_v8, %v256_v7  ;;  %v262_v12 = vsel %vm30_vm2, 1.0, %v221_v3  ;;  %v264_v13 = vsel %vm31_vm3, 1.0, %v221_v3  ;;  %vm118_vm4 = vcmask 1040384   ;;  %s176_s20 = sshll.u32 %s285_s2, 4  ;;  %s177_s20 = int_to_ptr.vmem [resolvable:$true] %s176_s20 }
   0x7   :  { %v46_v14 = vmul.f32 1.442695, %v44_v9  ;;  %v48_v15 = vmul.f32 1.442695, %v45_v10  ;;  %v81_v16 = vadd.f32 %v264_v13, %v262_v12  ;;  %v38_v40 = vmul.f32 %v22_v2, %v241_v0  ;;  %s207_s22 = scalar_lea.vmem %s177_s20, 16  ;;  %p212_p1 = scmp.lt.s32.totalorder %s177_s20, %s177_s20 }
   0x8   :  { %v72_v17 = vrot.slane %v71_v11, 4  ;;  %v70_v26 = vld [vmem:[#allocation2] sm:$0x1]  ;;  %v80_v29 = vld [vmem:[#allocation3] sm:$0x1]  ;;  %v36_v41 = vmax.f32 %v241_v0, 0.0  ;;  %v39_v44 = vmul.f32 %v23_v4, %v246_v1  ;;  %p208_p0 = scmp.ne.s32.totalorder %s177_s20, %s207_s22  ;;  %p213_p2 = scmp.lt.s32.totalorder %s207_s22, %s207_s22 }
   0x9   :  { %199 = vpow2.f32 %v46_v14  ;;  %v82_v18 = vrot.slane %v81_v16, 4  ;;  %v37_v46 = vmax.f32 %v246_v1, 0.0 }
   0xa   :  { %201 = vpow2.f32 %v48_v15  ;;  %v73_v19 = vadd.f32 %v72_v17, %v71_v11  ;;  %v40_v53 = vsub.f32 %v36_v41, %v38_v40  ;;  %p214_p3 = por %p213_p2, %p212_p1 }
   0xb   :  { %v83_v20 = vadd.f32 %v82_v18, %v81_v16  ;;  %v41_v56 = vsub.f32 %v37_v46, %v39_v44 }
   0xc   :  { %v74_v21 = vrot.slane %v73_v19, 2  ;;  %p215_p4 = pnand %p214_p3, %p208_p0 }
   0xd   :  { %v84_v22 = vrot.slane %v83_v20, 2 }
   0xe   :  { %v75_v23 = vadd.f32 %v74_v21, %v73_v19  ;;  %v90_v19 = vld [vmem:[#allocation4] sm:$0x1] }
   0xf   :  { %v85_v24 = vadd.f32 %v84_v22, %v83_v20 }
  0x10   :  { %v76_v25 = vrot.slane %v75_v23, 1 }
  0x11   :  { %v86_v27 = vrot.slane %v85_v24, 1 }
  0x12   :  { %v77_v28 = vadd.f32 %v76_v25, %v75_v23 }
  0x13   :  { %v200_v30 = vpop.eup %199  ;;  %v87_v31 = vadd.f32 %v86_v27, %v85_v24 }
  0x14   :  { %v202_v32 = vpop.eup %201  ;;  %v78_v33 = vadd.f32 %v77_v28, %v70_v26  ;;  %v50_v34 = vadd.f32 1.0, %v200_v30  ;;  %v53_v37 = vmul.f32 -0.5, %v200_v30  ;;  %v56_v42 = vand.u32 2147483647, %v200_v30 }
  0x15   :  { %v88_v35 = vadd.f32 %v87_v31, %v80_v29  ;;  %v59_v36 = vadd.f32 1.0, %v202_v32  ;;  %v62_v38 = vmul.f32 -0.5, %v202_v32  ;;  %v65_v47 = vand.u32 2147483647, %v202_v32 }
  0x16   :  { %79 = vst [vmem:[#allocation2] sm:$0x1] %v78_v33  ;;  %203 = vlog2.f32 %v50_v34  ;;  %v54_v39 = vadd.f32 1.0, %v53_v37  ;;  %vm57_vm5 = vcmp.lt.f32.partialorder %v56_v42, 0.0004427343 }
  0x17   :  { %89 = vst [vmem:[#allocation3] sm:$0x1] %v88_v35  ;;  %205 = vlog2.f32 %v59_v36  ;;  %v63_v43 = vadd.f32 1.0, %v62_v38  ;;  %vm66_vm6 = vcmp.lt.f32.partialorder %v65_v47, 0.0004427343 }
  0x18   :  { %v55_v50 = vmul.f32 %v200_v30, %v54_v39 }
  0x19   :  { %v64_v54 = vmul.f32 %v202_v32, %v63_v43 }
  0x1d   :  { %v117_v45 = vld [vmem:[#allocation2] sm:$0x1] }
  0x1e   :  { %v119_v48 = vsel %vm118_vm4, %v117_v45, 0.0  ;;  %v131_v49 = vld [vmem:[#allocation3] sm:$0x1] }
  0x1f   :  { %120 = vadd.xlane.f32.xlu0 %v119_v48  ;;  %v132_v52 = vsel %vm118_vm4, %v131_v49, 0.0 }
  0x20   :  { %v204_v51 = vpop.eup %203 }
  0x21   :  { %v206_v55 = vpop.eup %205  ;;  %v52_v57 = vmul.f32 0.6931472, %v204_v51 }
  0x22   :  { %v61_v58 = vmul.f32 0.6931472, %v206_v55 }
  0x23   :  { %133 = vadd.xlane.f32.xlu0 %v132_v52  ;;  %v58_v59 = vsel %vm57_vm5, %v55_v50, %v52_v57 }
  0x24   :  { %v67_v60 = vsel %vm66_vm6, %v64_v54, %v61_v58  ;;  %v68_v61 = vadd.f32 %v58_v59, %v40_v53 }
  0x25   :  { %v69_v62 = vadd.f32 %v67_v60, %v41_v56 }
  0x26   :  { %v91_v63 = vmul.f32 %v256_v7, %v68_v61  ;;  %v103_v0 = vmul.f32 %v262_v12, %v68_v61  ;;  %v102_v7 = vld [vmem:[#allocation5] sm:$0x1] }
  0x27   :  { %v92_v1 = vmul.f32 %v258_v8, %v69_v62  ;;  %v104_v2 = vmul.f32 %v264_v13, %v69_v62 }
  0x29   :  { %v93_v3 = vadd.f32 %v92_v1, %v91_v63  ;;  %v105_v4 = vadd.f32 %v104_v2, %v103_v0 }
  0x2b   :  { %v94_v5 = vrot.slane %v93_v3, 4  ;;  %v106_v6 = vrot.slane %v105_v4, 4 }
  0x2d   :  { %v95_v9 = vadd.f32 %v94_v5, %v93_v3  ;;  %v107_v10 = vadd.f32 %v106_v6, %v105_v4 }
  0x2f   :  { %v96_v11 = vrot.slane %v95_v9, 2  ;;  %v108_v14 = vrot.slane %v107_v10, 2 }
  0x31   :  { %v97_v15 = vadd.f32 %v96_v11, %v95_v9  ;;  %v109_v16 = vadd.f32 %v108_v14, %v107_v10 }
  0x33   :  { %v98_v17 = vrot.slane %v97_v15, 1  ;;  %v110_v18 = vrot.slane %v109_v16, 1 }
  0x35   :  { %v99_v20 = vadd.f32 %v98_v17, %v97_v15  ;;  %v111_v12 = vadd.f32 %v110_v18, %v109_v16 }
  0x37   :  { %v100_v21 = vadd.f32 %v99_v20, %v90_v19  ;;  %v112_v8 = vadd.f32 %v111_v12, %v102_v7 }
  0x39   :  { %101 = vst [vmem:[#allocation4] sm:$0x1] %v100_v21  ;;  %113 = vst [vmem:[#allocation5] sm:$0x1] %v112_v8 }
  0x40   :  { %v144_v13 = vld [vmem:[#allocation4] sm:$0x1]  ;;  %v157_v22 = vld [vmem:[#allocation5] sm:$0x1] }
  0x41   :  { %v145_v23 = vsel %vm118_vm4, %v144_v13, 0.0  ;;  %v158_v24 = vsel %vm118_vm4, %v157_v22, 0.0 }
  0x42   :  { %146 = vadd.xlane.f32.xlu1 %v145_v23 }
  0x46   :  { %159 = vadd.xlane.f32.xlu1 %v158_v24 }
  0xac   :  { %v121_v25 = vpop.xlane.xlu0 %120 }
  0xad   :  { %v122_v26 = vrot.slane %v121_v25, 4 }
  0xaf   :  { %v123_v27 = vadd.f32 %v122_v26, %v121_v25 }
  0xb0   :  { %v134_v28 = vpop.xlane.xlu0 %133 }
  0xb1   :  { %v124_v29 = vrot.slane %v123_v27, 2  ;;  %v135_v30 = vrot.slane %v134_v28, 4 }
  0xb3   :  { %v136_v31 = vadd.f32 %v135_v30, %v134_v28  ;;  %v125_v32 = vadd.f32 %v124_v29, %v123_v27 }
  0xb5   :  { %v137_v33 = vrot.slane %v136_v31, 2  ;;  %v126_v34 = vrot.slane %v125_v32, 1 }
  0xb7   :  { %v138_v35 = vadd.f32 %v137_v33, %v136_v31  ;;  %v127_v36 = vadd.f32 %v126_v34, %v125_v32 }
  0xb9   :  { %189 = vpush %v127_v36  ;;  %v139_v37 = vrot.slane %v138_v35, 1 }
  0xbb   :  { %v140_v38 = vadd.f32 %v139_v37, %v138_v35 }
  0xbd   :  { %191 = vpush %v140_v38 }
  0xcf   :  { %v147_v39 = vpop.xlane.xlu1 %146 }
  0xd0   :  { %v148_v40 = vrot.slane %v147_v39, 4 }
  0xd2   :  { %v149_v41 = vadd.f32 %v148_v40, %v147_v39 }
  0xd3   :  { %v160_v42 = vpop.xlane.xlu1 %159 }
  0xd4   :  { %v150_v43 = vrot.slane %v149_v41, 2  ;;  %v161_v44 = vrot.slane %v160_v42, 4 }
  0xd6   :  { %v162_v45 = vadd.f32 %v161_v44, %v160_v42  ;;  %v151_v46 = vadd.f32 %v150_v43, %v149_v41 }
  0xd8   :  { %v163_v47 = vrot.slane %v162_v45, 2  ;;  %v152_v48 = vrot.slane %v151_v46, 1 }
  0xda   :  { %v164_v49 = vadd.f32 %v163_v47, %v162_v45  ;;  %v153_v50 = vadd.f32 %v152_v48, %v151_v46 }
  0xdc   :  { %193 = vpush %v153_v50  ;;  %v165_v51 = vrot.slane %v164_v49, 1 }
  0xde   :  { %v166_v52 = vadd.f32 %v165_v51, %v164_v49 }
  0xe0   :  { %195 = vpush %v166_v52 }
  0xea   :  { %s190_s0 = spop %189 }
  0xeb   :  { %130 = sst [smem:[#allocation6]] %s190_s0 }
  0xee   :  { %s192_s1 = spop %191 }
  0xef   :  { %143 = sst [smem:[#allocation6 + $0x1]] %s192_s1 }
 0x10d   :  { %s194_s17 = spop %193 }
 0x10e   :  { %156 = sst [smem:[#allocation6 + $0x2]] %s194_s17 }
 0x111   :  { %s196_s21 = spop %195 }
 0x112   :  { %169 = sst [smem:[#allocation6 + $0x3]] %s196_s21 }
 0x113   :  { %218 = shalt.err (!%p215_p4)
}
 0x114   :  { %s222_s23 = smov [#allocation6]  }
 0x115   :  { %179 = dma.smem_to_vmem %s222_s23, 16, %s177_s20, [#allocation7]  }
 0x116   :  { %219 = dma.done.wait [#allocation7], 16  }
 0x117   :  { %220 = vsyncadd [#allocation7], 4294967280 }
 0x118   :  { %183 = sfence }
 0x119   :  { %184 = vsyncpa [#allocation7], 1 }

</bundles_post_ra>
